<compile_context>
chip_gen: v5e
topology: v5e:2x2
jax: 0.10.0
libtpu: 0.0.40
codegen_flags: <defaults>
</compile_context>

<pallas_src>
import functools

import jax
import jax.numpy as jnp
import numpy as np
from jax.experimental import pallas as pl
from jax.experimental.pallas import tpu as pltpu

# ---------------- config (small, consistent with the module) ----------------
N_VOCAB = 50
VOCAB_PAD = 64              # vocab padded to a lane-friendly 64 for the fusion
EMBED = 32                  # config.embed
NUM_FILTERS = 8             # config.num_filters
FILTER_SIZES = (2, 3, 4)    # config.filter_sizes
KMAX = max(FILTER_SIZES)
NF_TOTAL = NUM_FILTERS * len(FILTER_SIZES)
BATCH = 2
SEQ = 8                     # sentence length


# ---------------------------- Pallas kernel ---------------------------------
def _textcnn_fused_kernel(ids_ref, w_ref, aux_ref, o_ref, *,
                          batch, seq, vocab_pad, kmax, nf_total):
    """Embedding + all conv branches + max-pool + bias + ReLU, fully fused.

    ids_ref:  [B, L]              int32  token ids
    w_ref:    [KMAX*VP, 3*F]      f32    table-folded conv weights
    aux_ref:  [L+1, 3*F]          f32    rows 0..L-1: -1e30 time mask, row L: bias
    o_ref:    [B, 3*F]            f32    pooled + concatenated output
    """
    ids = ids_ref[...]                                              # [B, L]
    # Sentinel id (== vocab_pad) matches no one-hot column -> zero window row
    # for out-of-range time positions (those positions are also -1e30 masked).
    sent = jnp.full((batch, kmax - 1), vocab_pad, jnp.int32)
    ids_pad = jnp.concatenate([ids, sent], axis=1)                  # [B, L+KMAX-1]

    # Shifted one-hot windows built in registers: column block s holds
    # one_hot(ids[b, t+s]).  Window layout matches w_fused's [s, v] row order.
    v_iota = jax.lax.broadcasted_iota(jnp.int32, (batch, seq, vocab_pad), 2)
    blocks = [
        (ids_pad[:, s:s + seq][:, :, None] == v_iota).astype(jnp.float32)
        for s in range(kmax)
    ]                                                               # KMAX x [B, L, VP]
    win = jnp.concatenate(blocks, axis=2)                           # [B, L, KMAX*VP]
    win = win.reshape(batch * seq, kmax * vocab_pad)                # [B*L, 256]

    # Single MXU contraction, K = KMAX*VP = 256.
    scores = jnp.dot(win, w_ref[...],
                     preferred_element_type=jnp.float32)            # [B*L, 3*F]

    # Mask invalid trailing conv positions, max-pool over time, then bias+ReLU
    # on the pooled [B, 3*F] result (equivalent: bias is per-filter constant,
    # ReLU is monotone, and at least one valid position exists per branch).
    mask = aux_ref[0:seq, :]                                        # [L, 3*F]
    scores = scores.reshape(batch, seq, nf_total) + mask[None, :, :]
    pooled = jnp.max(scores, axis=1)                                # [B, 3*F]
    bias = aux_ref[seq:seq + 1, :]                                  # [1, 3*F]
    o_ref[...] = jnp.maximum(pooled + bias, 0.0)


# ------------------------------ forward pass --------------------------------
def text_feature_extractor_forward(x_ids, params):
    """Mirrors TextFeatureExtractor.forward (inference mode)."""
    B, L = x_ids.shape
    kernel = functools.partial(
        _textcnn_fused_kernel,
        batch=B, seq=L, vocab_pad=VOCAB_PAD, kmax=KMAX, nf_total=NF_TOTAL)
    out = pl.pallas_call(
        kernel,
        out_shape=jax.ShapeDtypeStruct((B, NF_TOTAL), jnp.float32),
        in_specs=[pl.BlockSpec(memory_space=pltpu.MemorySpace.VMEM)] * 3,
        out_specs=pl.BlockSpec(memory_space=pltpu.MemorySpace.VMEM),
    )(x_ids, params["w_fused"], params["aux"])
    # TODO(synk): nn.Dropout is identity in eval mode; training-mode random
    # dropout masks are not implemented here.
    return out


# ----------------------------- param init -----------------------------------
def init_params(key):
    k_emb, *k_conv = jax.random.split(key, 1 + 2 * len(FILTER_SIZES))
    # nn.Embedding(n_vocab, embed, padding_idx=n_vocab-1): zero the pad row.
    table = 0.02 * jax.random.normal(k_emb, (N_VOCAB, EMBED), jnp.float32)
    table = table.at[N_VOCAB - 1].set(0.0)

    w_blocks = []
    b_blocks = []
    convs_pt = []  # PyTorch-layout weights for the reference check
    for i, k in enumerate(FILTER_SIZES):
        kw, kb = k_conv[2 * i], k_conv[2 * i + 1]
        # PyTorch Conv2d weight layout: [out_ch=F, in_ch=1, k, E]
        w_pt = 0.05 * jax.random.normal(kw, (NUM_FILTERS, 1, k, EMBED), jnp.float32)
        b = 0.01 * jax.random.normal(kb, (NUM_FILTERS,), jnp.float32)
        # Per-branch weight as [k, E, F], zero-padded along the window axis to
        # KMAX, flattened to [KMAX*E, F] (matches window column order).
        w_kef = jnp.transpose(w_pt[:, 0], (1, 2, 0))                       # [k, E, F]
        w_pad = jnp.zeros((KMAX, EMBED, NUM_FILTERS), jnp.float32).at[:k].set(w_kef)
        w_blocks.append(w_pad.reshape(KMAX * EMBED, NUM_FILTERS))
        b_blocks.append(b)
        convs_pt.append((w_pt, b))

    w_all = jnp.concatenate(w_blocks, axis=1)                 # [KMAX*E, 3*F]
    b_all = jnp.concatenate(b_blocks).reshape(1, NF_TOTAL)    # [1, 3*F]

    # Fold the embedding table into the conv weights: for each shift s,
    # w_fused block = pad(table)[VP, E] @ w_all[s*E:(s+1)*E, :].
    table_pad = jnp.zeros((VOCAB_PAD, EMBED), jnp.float32).at[:N_VOCAB].set(table)
    w_fused = jnp.concatenate(
        [table_pad @ w_all[s * EMBED:(s + 1) * EMBED, :] for s in range(KMAX)],
        axis=0)                                                # [KMAX*VP, 3*F]

    # Additive mask over (time, filter-column): conv output for filter size k
    # only exists for t in [0, L-k]; later positions get -1e30 so the
    # max-pool ignores them.
    limits = np.repeat(
        np.array([SEQ - k + 1 for k in FILTER_SIZES], np.int32), NUM_FILTERS)
    t_idx = np.arange(SEQ, dtype=np.int32)[:, None]
    mask = np.where(t_idx < limits[None, :], 0.0, -1e30).astype(np.float32)  # [L, 3*F]

    # Pack mask + bias into a single aux input: rows 0..L-1 mask, row L bias.
    aux = jnp.concatenate([jnp.asarray(mask), b_all], axis=0)  # [L+1, 3*F]

    params = {
        "embedding": table,
        "w_fused": w_fused,
        "aux": aux,
    }
    return params, convs_pt


# --------------------------- pure-JAX reference ------------------------------
def reference_forward(x_ids, table, convs_pt):
    embed = jnp.take(table, x_ids, axis=0)                    # [B, L, E]
    outs = []
    for k, (w_pt, b) in zip(FILTER_SIZES, convs_pt):
        l_out = SEQ - k + 1
        windows = jnp.stack(
            [embed[:, s:s + l_out, :] for s in range(k)], axis=2)  # [B, Lout, k, E]
        scores = jnp.einsum("btke,fke->btf", windows, w_pt[:, 0]) + b[None, None, :]
        scores = jnp.maximum(scores, 0.0)
        outs.append(jnp.max(scores, axis=1))                  # [B, F]
    return jnp.concatenate(outs, axis=1)


# --------------------------------- main --------------------------------------
if __name__ == "__main__":
    key = jax.random.PRNGKey(0)
    k_params, k_ids = jax.random.split(key)
    params, convs_pt = init_params(k_params)

    # Token ids (avoid the padding index for variety; any id is valid anyway).
    x = jax.random.randint(k_ids, (BATCH, SEQ), 0, N_VOCAB - 1, dtype=jnp.int32)

    out = text_feature_extractor_forward(x, params)
    out = jax.block_until_ready(out)

    ref = reference_forward(x, params["embedding"], convs_pt)
    ref = jax.block_until_ready(ref)

    assert out.shape == (BATCH, NF_TOTAL), out.shape
    np.testing.assert_allclose(np.asarray(out), np.asarray(ref), rtol=1e-5, atol=1e-5)

    print("KERNEL_OK")
</pallas_src>

<mosaic_0001>
module attributes {stable_mosaic.version = 11 : i64} {
  func.func @_textcnn_fused_kernel(%arg0: memref<2x8xi32, #tpu.memory_space<vmem>>, %arg1: memref<256x24xf32, #tpu.memory_space<vmem>>, %arg2: memref<9x24xf32, #tpu.memory_space<vmem>>, %arg3: memref<2x24xf32, #tpu.memory_space<vmem>>) attributes {dimension_semantics = [], scalar_prefetch = 0 : i64, scratch_operands = 0 : i64, tpu.core_type = #tpu.core_type<tc>} {
    %c0 = arith.constant 0 : index
    %c0_0 = arith.constant 0 : index
    %0 = vector.load %arg0[%c0, %c0_0] : memref<2x8xi32, #tpu.memory_space<vmem>>, vector<2x8xi32>
    %c64_i32 = arith.constant 64 : i32
    %1 = vector.broadcast %c64_i32 : i32 to vector<2x3xi32>
    %2 = tpu.concatenate %0, %1 in 1 : vector<2x8xi32>, vector<2x3xi32> -> vector<2x11xi32>
    %3 = tpu.iota {dimensions = array<i32: 2>} : vector<2x8x64xi32>
    %4 = vector.extract_strided_slice %2 {offsets = [0, 0], sizes = [2, 8], strides = [1, 1]} : vector<2x11xi32> to vector<2x8xi32>
    %5 = vector.shape_cast %4 : vector<2x8xi32> to vector<2x8x1xi32>
    %6 = vector.broadcast %5 : vector<2x8x1xi32> to vector<2x8x64xi32>
    %7 = arith.cmpi eq, %6, %3 : vector<2x8x64xi32>
    %8 = arith.extui %7 : vector<2x8x64xi1> to vector<2x8x64xi32>
    %9 = arith.sitofp %8 : vector<2x8x64xi32> to vector<2x8x64xf32>
    %10 = vector.extract_strided_slice %2 {offsets = [0, 1], sizes = [2, 8], strides = [1, 1]} : vector<2x11xi32> to vector<2x8xi32>
    %11 = vector.shape_cast %10 : vector<2x8xi32> to vector<2x8x1xi32>
    %12 = vector.broadcast %11 : vector<2x8x1xi32> to vector<2x8x64xi32>
    %13 = arith.cmpi eq, %12, %3 : vector<2x8x64xi32>
    %14 = arith.extui %13 : vector<2x8x64xi1> to vector<2x8x64xi32>
    %15 = arith.sitofp %14 : vector<2x8x64xi32> to vector<2x8x64xf32>
    %16 = vector.extract_strided_slice %2 {offsets = [0, 2], sizes = [2, 8], strides = [1, 1]} : vector<2x11xi32> to vector<2x8xi32>
    %17 = vector.shape_cast %16 : vector<2x8xi32> to vector<2x8x1xi32>
    %18 = vector.broadcast %17 : vector<2x8x1xi32> to vector<2x8x64xi32>
    %19 = arith.cmpi eq, %18, %3 : vector<2x8x64xi32>
    %20 = arith.extui %19 : vector<2x8x64xi1> to vector<2x8x64xi32>
    %21 = arith.sitofp %20 : vector<2x8x64xi32> to vector<2x8x64xf32>
    %22 = vector.extract_strided_slice %2 {offsets = [0, 3], sizes = [2, 8], strides = [1, 1]} : vector<2x11xi32> to vector<2x8xi32>
    %23 = vector.shape_cast %22 : vector<2x8xi32> to vector<2x8x1xi32>
    %24 = vector.broadcast %23 : vector<2x8x1xi32> to vector<2x8x64xi32>
    %25 = arith.cmpi eq, %24, %3 : vector<2x8x64xi32>
    %26 = arith.extui %25 : vector<2x8x64xi1> to vector<2x8x64xi32>
    %27 = arith.sitofp %26 : vector<2x8x64xi32> to vector<2x8x64xf32>
    %28 = tpu.concatenate %9, %15, %21, %27 in 2 : vector<2x8x64xf32>, vector<2x8x64xf32>, vector<2x8x64xf32>, vector<2x8x64xf32> -> vector<2x8x256xf32>
    %29 = vector.shape_cast %28 : vector<2x8x256xf32> to vector<16x256xf32>
    %c0_1 = arith.constant 0 : index
    %c0_2 = arith.constant 0 : index
    %30 = vector.load %arg1[%c0_1, %c0_2] : memref<256x24xf32, #tpu.memory_space<vmem>>, vector<256x24xf32>
    %cst = arith.constant dense<0.000000e+00> : vector<16x24xf32>
    %31 = tpu.matmul %29, %30, %cst {dimension_numbers = #tpu.dot_dimension_numbers<[1], [0], [0], [1], [0, 0, 1, 1], [], []>} : vector<16x256xf32>, vector<256x24xf32>, vector<16x24xf32> -> vector<16x24xf32>
    %c0_3 = arith.constant 0 : index
    %c0_4 = arith.constant 0 : index
    %32 = vector.load %arg2[%c0_3, %c0_4] : memref<9x24xf32, #tpu.memory_space<vmem>>, vector<8x24xf32>
    %33 = vector.shape_cast %31 : vector<16x24xf32> to vector<2x8x24xf32>
    %34 = vector.shape_cast %32 : vector<8x24xf32> to vector<1x8x24xf32>
    %35 = vector.broadcast %34 : vector<1x8x24xf32> to vector<2x8x24xf32>
    %36 = arith.addf %33, %35 : vector<2x8x24xf32>
    %cst_5 = arith.constant dense<0xFF800000> : vector<2x24xf32>
    %37 = vector.multi_reduction <maximumf>, %36, %cst_5 [1] : vector<2x8x24xf32> to vector<2x24xf32>
    %c8 = arith.constant 8 : index
    %c0_6 = arith.constant 0 : index
    %38 = vector.load %arg2[%c8, %c0_6] : memref<9x24xf32, #tpu.memory_space<vmem>>, vector<1x24xf32>
    %39 = vector.broadcast %38 : vector<1x24xf32> to vector<2x24xf32>
    %40 = arith.addf %37, %39 : vector<2x24xf32>
    %cst_7 = arith.constant 0.000000e+00 : f32
    %41 = vector.broadcast %cst_7 : f32 to vector<2x24xf32>
    %42 = arith.maximumf %40, %41 : vector<2x24xf32>
    %c0_8 = arith.constant 0 : index
    %c0_9 = arith.constant 0 : index
    %43 = vector.load %arg3[%c0_8, %c0_9] : memref<2x24xf32, #tpu.memory_space<vmem>>, vector<2x24xf32>
    tpu.vector_store %arg3[%c0_8, %c0_9], %42 {strides = array<i32>} : memref<2x24xf32, #tpu.memory_space<vmem>>, vector<2x24xf32>,
    return
  }
}

</mosaic_0001>

<bundles_post_ra>
// kernel: tpu_custom_call.1
= control target key start
LH: loop header
LB: loop body
LE: loop exit
PB: predicated region body
PF: predicated region fallthrough
CT: control target
= control target key end

     0   :  { %v18_v0 = vlaneseq  ;;  %s496_s0 = inlined_call_operand.vmem [shape: s32[2,8], index: 0, kind: input, shape index: {}]   ;;  %s497_s1 = inlined_call_operand.vmem [shape: f32[256,24], index: 1, kind: input, shape index: {}]   ;;  %s498_s2 = inlined_call_operand.vmem [shape: f32[9,24], index: 2, kind: input, shape index: {}]   ;;  %s499_s3 = inlined_call_operand.hbm [shape: f32[2,24], index: 3, kind: output, shape index: {}]  }
   0x1   :  { %8 = vsyncpa [#allocation3], 0  ;;  %v15_v3 = vld [vmem:[%s496_s0] sm:$0x3]  ;;  %vm16_vm0 = vcmask 64512   ;;  %v130_v9 = vld [vmem:[%s497_s1 + $0x78] sm:$0xff] }
   0x2   :  { %v22_v1 = vshrl.u32 %v18_v0, 7  ;;  %v17_v4 = vsel %vm16_vm0, %v15_v3, 64  ;;  %v146_v10 = vld [vmem:[%s497_s1 + $0xf8] sm:$0xff]  ;;  %v129_v11 = vld [vmem:[%s497_s1 + $0x70] sm:$0xff]  ;;  %249 = vmatpush.msra.mxu2 %v130_v9  ;;  %v128_v13 = vld [vmem:[%s497_s1 + $0x68] sm:$0xff]  ;;  %147 = vmatpush.msra.mxu0 %v130_v9  ;;  %v415_v27 = vand.u32 127, %v18_v0 }
   0x3   :  { %v27_v5 = vperm.slane %v17_v4, 1  ;;  %v357_v6 = vperm.slane %v17_v4, 0  ;;  %265 = vmatpush.msra.mxu3 %v146_v10  ;;  %v145_v12 = vld [vmem:[%s497_s1 + $0xf0] sm:$0xff]  ;;  %v144_v14 = vld [vmem:[%s497_s1 + $0xe8] sm:$0xff]  ;;  %170 = vmatpush.msra.mxu1 %v146_v10  ;;  %v127_v15 = vld [vmem:[%s497_s1 + $0x60] sm:$0xff]  ;;  %v330_v33 = vmov 0.0  }
   0x4   :  { %v42_v2 = vadd.s32 1, %v22_v1  ;;  %288 = vset.pattern.permute.xlu2 %v22_v1  ;;  %v360_v7 = vadd.s32 3, %v22_v1  ;;  %v60_v8 = vadd.s32 2, %v22_v1  ;;  %250 = vmatpush.msra.mxu2 %v129_v11  ;;  %v143_v16 = vld [vmem:[%s497_s1 + $0xe0] sm:$0xff]  ;;  %v126_v17 = vld [vmem:[%s497_s1 + $0x58] sm:$0xff]  ;;  %v125_v19 = vld [vmem:[%s497_s1 + $0x50] sm:$0xff] }
   0x5   :  { %266 = vmatpush.msra.mxu3 %v145_v12  ;;  %148 = vmatpush.msra.mxu0 %v129_v11  ;;  %v142_v18 = vld [vmem:[%s497_s1 + $0xd8] sm:$0xff]  ;;  %v141_v20 = vld [vmem:[%s497_s1 + $0xd0] sm:$0xff]  ;;  %v124_v21 = vld [vmem:[%s497_s1 + $0x48] sm:$0xff]  ;;  %s331_s25 = smov 64   ;;  %vm110_vm7 = vcmask 523264   ;;  %vm196_vm10 = vcmask 195584  }
   0x6   :  { %286 = vset.pattern.permute.xlu1 %v42_v2  ;;  %284 = vset.pattern.permute.xlu0 %v42_v2  ;;  %v140_v22 = vld [vmem:[%s497_s1 + $0xc8] sm:$0xff]  ;;  %v123_v25 = vld [vmem:[%s497_s1 + $0x40] sm:$0xff]  ;;  %v122_v28 = vld [vmem:[%s497_s1 + $0x38] sm:$0xff]  ;;  %s232_s29 = sshll.u32 %s499_s3, 4  ;;  %vm220_vm11 = vcmask 1041409   ;;  %vm223_vm12 = vcmask 189440   ;;  %s233_s29 = int_to_ptr.hbm [resolvable:$true] %s232_s29 }
   0x7   :  { %171 = vmatpush.msra.mxu1 %v145_v12  ;;  %251 = vmatpush.msra.mxu2 %v128_v13  ;;  %v139_v26 = vld [vmem:[%s497_s1 + $0xc0] sm:$0xff]  ;;  %v138_v29 = vld [vmem:[%s497_s1 + $0xb8] sm:$0xff]  ;;  %v121_v30 = vld [vmem:[%s497_s1 + $0x30] sm:$0xff] }
   0x8   :  { %267 = vmatpush.msra.mxu3 %v144_v14  ;;  %149 = vmatpush.msra.mxu0 %v128_v13  ;;  %v137_v31 = vld [vmem:[%s497_s1 + $0xb0] sm:$0xff]  ;;  %v120_v41 = vld [vmem:[%s497_s1 + $0x28] sm:$0xff]  ;;  %v119_v43 = vld [vmem:[%s497_s1 + $0x20] sm:$0xff] }
   0x9   :  { %172 = vmatpush.msra.mxu1 %v144_v14  ;;  %252 = vmatpush.msra.mxu2 %v127_v15  ;;  %v136_v42 = vld [vmem:[%s497_s1 + $0xa8] sm:$0xff]  ;;  %v135_v44 = vld [vmem:[%s497_s1 + $0xa0] sm:$0xff]  ;;  %v118_v45 = vld [vmem:[%s497_s1 + $0x18] sm:$0xff] }
   0xa   :  { %268 = vmatpush.msra.mxu3 %v143_v16  ;;  %150 = vmatpush.msra.mxu0 %v127_v15  ;;  %v134_v46 = vld [vmem:[%s497_s1 + $0x98] sm:$0xff]  ;;  %v117_v47 = vld [vmem:[%s497_s1 + $0x10] sm:$0xff]  ;;  %v116_v49 = vld [vmem:[%s497_s1 + $0x8] sm:$0xff] }
   0xb   :  { %253 = vmatpush.msra.mxu2 %v126_v17  ;;  %173 = vmatpush.msra.mxu1 %v143_v16  ;;  %v133_v48 = vld [vmem:[%s497_s1 + $0x90] sm:$0xff]  ;;  %v132_v50 = vld [vmem:[%s497_s1 + $0x88] sm:$0xff]  ;;  %v115_v51 = vld [vmem:[%s497_s1] sm:$0xff] }
   0xc   :  { %32 = vperm.xlu2 %288, %v27_v5   ;;  %269 = vmatpush.msra.mxu3 %v142_v18  ;;  %v131_v52 = vld [vmem:[%s497_s1 + $0x80] sm:$0xff] }
   0xd   :  { %151 = vmatpush.msra.mxu0 %v126_v17  ;;  %254 = vmatpush.msra.mxu2 %v125_v19  ;;  %v193_v9 = vld [vmem:[%s498_s2] sm:$0xff] }
   0xe   :  { %50 = vperm.xlu0 %284, %v27_v5   ;;  %44 = vperm.xlu1 %286, %v357_v6  }
   0xf   :  { %270 = vmatpush.msra.mxu3 %v141_v20  ;;  %174 = vmatpush.msra.mxu1 %v142_v18 }
  0x10   :  { %152 = vmatpush.msra.mxu0 %v125_v19  ;;  %255 = vmatpush.msra.mxu2 %v124_v21 }
  0x11   :  { %271 = vmatpush.msra.mxu3 %v140_v22  ;;  %175 = vmatpush.msra.mxu1 %v141_v20 }
  0x12   :  { %153 = vmatpush.msra.mxu0 %v124_v21  ;;  %256 = vmatpush.msra.mxu2 %v123_v25 }
  0x13   :  { %272 = vmatpush.msra.mxu3 %v139_v26  ;;  %176 = vmatpush.msra.mxu1 %v140_v22 }
  0x14   :  { %289 = vset.pattern.permute.xlu2 %v60_v8  ;;  %257 = vmatpush.msra.mxu2 %v122_v28 }
  0x15   :  { %273 = vmatpush.msra.mxu3 %v138_v29  ;;  %154 = vmatpush.msra.mxu0 %v123_v25 }
  0x16   :  { %285 = vset.pattern.permute.xlu0 %v360_v7  ;;  %287 = vset.pattern.permute.xlu1 %v360_v7 }
  0x17   :  { %177 = vmatpush.msra.mxu1 %v139_v26  ;;  %258 = vmatpush.msra.mxu2 %v121_v30 }
  0x18   :  { %274 = vmatpush.msra.mxu3 %v137_v31  ;;  %155 = vmatpush.msra.mxu0 %v122_v28 }
  0x19   :  { %178 = vmatpush.msra.mxu1 %v138_v29  ;;  %259 = vmatpush.msra.mxu2 %v120_v41 }
  0x1a   :  { %156 = vmatpush.msra.mxu0 %v121_v30  ;;  %275 = vmatpush.msra.mxu3 %v136_v42 }
  0x1b   :  { %179 = vmatpush.msra.mxu1 %v137_v31  ;;  %260 = vmatpush.msra.mxu2 %v119_v43 }
  0x1c   :  { %68 = vperm.xlu2 %289, %v27_v5   ;;  %157 = vmatpush.msra.mxu0 %v120_v41 }
  0x1d   :  { %180 = vmatpush.msra.mxu1 %v136_v42  ;;  %276 = vmatpush.msra.mxu3 %v135_v44 }
  0x1e   :  { %86 = vperm.xlu0 %285, %v27_v5   ;;  %80 = vperm.xlu1 %287, %v357_v6  }
  0x1f   :  { %158 = vmatpush.msra.mxu0 %v119_v43  ;;  %181 = vmatpush.msra.mxu1 %v135_v44 }
  0x20   :  { %261 = vmatpush.msra.mxu2 %v118_v45  ;;  %277 = vmatpush.msra.mxu3 %v134_v46 }
  0x21   :  { %159 = vmatpush.msra.mxu0 %v118_v45  ;;  %182 = vmatpush.msra.mxu1 %v134_v46 }
  0x22   :  { %262 = vmatpush.msra.mxu2 %v117_v47  ;;  %278 = vmatpush.msra.mxu3 %v133_v48 }
  0x23   :  { %160 = vmatpush.msra.mxu0 %v117_v47  ;;  %183 = vmatpush.msra.mxu1 %v133_v48 }
  0x24   :  { %295 = vset.pattern.permute.xlu2 %v22_v1  ;;  %263 = vmatpush.msra.mxu2 %v116_v49 }
  0x25   :  { %279 = vmatpush.msra.mxu3 %v132_v50  ;;  %161 = vmatpush.msra.mxu0 %v116_v49 }
  0x26   :  { %296 = vset.pattern.permute.xlu0 %v60_v8  ;;  %184 = vmatpush.msra.mxu1 %v132_v50 }
  0x27   :  { %264 = vmatpush.msra.mxu2 %v115_v51  ;;  %280 = vmatpush.msra.mxu3 %v131_v52 }
  0x28   :  { %162 = vmatpush.msra.mxu0 %v115_v51  ;;  %185 = vmatpush.msra.mxu1 %v131_v52 }
  0x2c   :  { %25 = vperm.xlu2 %295, %v357_v6  }
  0x2e   :  { %62 = vperm.xlu0 %296, %v357_v6  }
  0x36   :  { %302 = vset.pattern.permute.xlu0 %v360_v7 }
  0x66   :  { %v33_v53 = vpop.permute.xlu2 %32 }
  0x67   :  { %vm35_vm5 = vcmp.eq.s32.totalorder %v33_v53, %v415_v27 }
  0x68   :  { %v242_v58 = vsel %vm35_vm5, 1.0, %v330_v33 }
  0x76   :  { %v69_v54 = vpop.permute.xlu2 %68 }
  0x77   :  { %vm71_vm6 = vcmp.eq.s32.totalorder %v69_v54, %v415_v27 }
  0x78   :  { %v246_v59 = vsel %vm71_vm6, 1.0, %v330_v33 }
  0x80   :  { %v51_v23 = vpop.permute.xlu0 %50  ;;  %v45_v24 = vpop.permute.xlu1 %44 }
  0x81   :  { %vm53_vm1 = vcmp.eq.s32.totalorder %v51_v23, %v415_v27  ;;  %vm52_vm4 = vcmp.eq.s32.totalorder %v45_v24, %v415_v27 }
  0x82   :  { %v244_v34 = vsel %vm53_vm1, 1.0, %v330_v33  ;;  %v243_v39 = vsel %vm52_vm4, 1.0, %v330_v33 }
  0x86   :  { %v26_v61 = vpop.permute.xlu2 %25 }
  0x87   :  { %vm34_vm9 = vcmp.eq.s32.totalorder %v26_v61, %v415_v27 }
  0x88   :  { %v241_v1 = vsel %vm34_vm9, 1.0, %v330_v33 }
  0x90   :  { %v87_v32 = vpop.permute.xlu0 %86  ;;  %v81_v36 = vpop.permute.xlu1 %80 }
  0x91   :  { %vm89_vm2 = vcmp.eq.s32.totalorder %v87_v32, %v415_v27  ;;  %vm88_vm3 = vcmp.eq.s32.totalorder %v81_v36, %v415_v27 }
  0x92   :  { %v248_v35 = vsel %vm89_vm2, 1.0, %v330_v33  ;;  %v247_v38 = vsel %vm88_vm3, 1.0, %v330_v33 }
  0x93   :  { %v290_v37 = vpack.i.bf16 %v248_v35, %v244_v34  ;;  %v297_v40 = vpack.i.bf16 %v247_v38, %v243_v39 }
  0x95   :  { %291 = vrot.lane.b32.xlu1 %v290_v37, %s331_s25 }
  0x9d   :  { %298 = vrot.lane.b32.xlu1 %v297_v40, %s331_s25  ;;  %s332_s25 = smov [#allocation2]  }
  0x9e   :  { %s230_s26 = sshll.u32 %s332_s25, 4  ;;  %s231_s26 = int_to_ptr.vmem [resolvable:$true] %s230_s26 }
  0xa0   :  { %v63_v60 = vpop.permute.xlu0 %62 }
  0xa1   :  { %vm70_vm8 = vcmp.eq.s32.totalorder %v63_v60, %v415_v27  ;;  %v303_v27 = vld [vmem:[%s498_s2 + $0x8] ss:$0 sm:$0xff] }
  0xa2   :  { %v245_v0 = vsel %vm70_vm8, 1.0, %v330_v33 }
 0x107   :  { %v292_v55 = vpop.permute.xlu1 %291 }
 0x108   :  { %v294_v56 = vunpack.i.h.bf16 %v292_v55  ;;  %v293_v57 = vunpack.i.l.bf16 %v292_v55 }
 0x10a   :  { %v112_v62 = vsel %vm110_vm7, %v242_v58, %v293_v57  ;;  %v114_v63 = vsel %vm110_vm7, %v246_v59, %v294_v56 }
 0x10b   :  { %166 = vmatmul.f32.vlgmr.msra.gmra.mxu2 %v112_v62  ;;  %189 = vmatmul.f32.vlgmr.msra.gmra.mxu3 %v114_v63 }
 0x10f   :  { %v299_v2 = vpop.permute.xlu1 %298 }
 0x110   :  { %v301_v3 = vunpack.i.h.bf16 %v299_v2  ;;  %v300_v4 = vunpack.i.l.bf16 %v299_v2 }
 0x112   :  { %v111_v5 = vsel %vm110_vm7, %v241_v1, %v300_v4  ;;  %v113_v6 = vsel %vm110_vm7, %v245_v0, %v301_v3 }
 0x113   :  { %163 = vmatmul.f32.vlgmr.msra.gmra.mxu0 %v111_v5  ;;  %186 = vmatmul.f32.vlgmr.msra.gmra.mxu1 %v113_v6 }
 0x18e   :  { %v167_v7 = vpop.f32.mrf.mxu2  ;;  %v190_v8 = vpop.f32.mrf.mxu3 }
 0x18f   :  { %v191_v10 = vadd.f32 %v190_v8, %v167_v7 }
 0x190   :  { %v164_v11 = vpop.f32.mrf.mxu0  ;;  %v187_v12 = vpop.f32.mrf.mxu1 }
 0x191   :  { %v195_v13 = vadd.f32 %v193_v9, %v191_v10  ;;  %v188_v14 = vadd.f32 %v187_v12, %v164_v11 }
 0x193   :  { %v204_v15 = vsel %vm196_vm10, %v195_v13, -inf  ;;  %v194_v16 = vadd.f32 %v193_v9, %v188_v14 }
 0x194   :  { %v205_v17 = vrot.slane %v204_v15, 4 }
 0x195   :  { %v197_v18 = vsel %vm196_vm10, %v194_v16, -inf }
 0x196   :  { %v206_v19 = vmax.f32 %v204_v15, %v205_v17  ;;  %v198_v20 = vrot.slane %v197_v18, 4 }
 0x198   :  { %v207_v21 = vrot.slane %v206_v19, 2  ;;  %v199_v22 = vmax.f32 %v197_v18, %v198_v20 }
 0x19a   :  { %v208_v23 = vmax.f32 %v206_v19, %v207_v21  ;;  %v200_v24 = vrot.slane %v199_v22, 2 }
 0x19c   :  { %v209_v25 = vrot.slane %v208_v23, 1  ;;  %v201_v26 = vmax.f32 %v199_v22, %v200_v24 }
 0x19e   :  { %v210_v28 = vmax.f32 %v208_v23, %v209_v25  ;;  %v202_v29 = vrot.slane %v201_v26, 1 }
 0x1a0   :  { %v203_v30 = vmax.f32 %v201_v26, %v202_v29  ;;  %v214_v31 = vadd.f32 %v303_v27, %v210_v28 }
 0x1a2   :  { %v213_v32 = vadd.f32 %v303_v27, %v203_v30  ;;  %v216_v33 = vmax.f32 %v214_v31, 0.0 }
 0x1a4   :  { %v215_v34 = vmax.f32 %v213_v32, 0.0  ;;  %v219_v35 = vrot.slane %v216_v33, 7 }
 0x1a6   :  { %v221_v36 = vsel %vm220_vm11, %v219_v35, %v215_v34 }
 0x1a7   :  { %224 = vst.msk [vmem:[#allocation2] sm:$0x3] %vm223_vm12, %v221_v36 }
 0x1a8   :  { %235 = dma.vmem_to_hbm [thread:$0]  %s231_s26, 32, %s233_s29, [#allocation3]  }
 0x1a9   :  { %328 = dma.done.wait [#allocation3], 32  }
 0x1aa   :  { %329 = vsyncadd [#allocation3], 4294967264 }
 0x1ab   :  { %240 = vsyncpa [#allocation3], 1 }

</bundles_post_ra>
